<compile_context>
chip_gen: v7x
topology: tpu7x:2x2x1
jax: 0.10.0
libtpu: 0.0.40
codegen_flags: <defaults>
</compile_context>

<pallas_src>
import math

import jax
import jax.numpy as jnp
from jax.experimental import pallas as pl
from jax.experimental.pallas import tpu as pltpu

_LANE = 128
_LANE_CAP = 8192                      # max width of the lane-dense last dim
_TARGET_BLOCK_BYTES = 2 * 1024 * 1024 # ~2 MiB / buffer: fits v7x, fine on v5e/v6e


def _copy_kernel(x_ref, o_ref):
    # Identity copy of the current VMEM tile.
    o_ref[...] = x_ref[...]


def _resolve_shape(total, shape):
    shape = list(shape)
    neg = [i for i, s in enumerate(shape) if s == -1]
    if len(neg) > 1:
        raise ValueError("only one dimension can be -1")
    if neg:
        known = math.prod(s for s in shape if s != -1)
        if known == 0 or total % known != 0:
            raise ValueError(f"cannot view {total} elements as {tuple(shape)}")
        shape[neg[0]] = total // known
    if math.prod(shape) != total:
        raise ValueError(f"cannot view {total} elements as {tuple(shape)}")
    return tuple(shape)


def _sublanes_for(dtype):
    # Native sublane tiling: 8 for 4-byte, 16 for 2-byte, 32 for 1-byte dtypes.
    itemsize = jnp.dtype(dtype).itemsize
    return {4: 8, 2: 16, 1: 32}.get(itemsize, 8)


def _choose_lanes(total):
    """Largest multiple of 128 that divides `total`, capped at _LANE_CAP."""
    m = total // _LANE
    max_k = max(1, min(m, _LANE_CAP // _LANE))
    for cand in range(max_k, 0, -1):
        if m % cand == 0:
            return _LANE * cand
    return _LANE


def view_pallas(x, *shape):
    """Equivalent of `x.view(*shape)` with the copy done in a Pallas kernel."""
    total = x.size
    out_shape = _resolve_shape(total, shape)
    if total == 0:
        return jnp.reshape(x, out_shape)

    itemsize = jnp.dtype(x.dtype).itemsize
    sub = _sublanes_for(x.dtype)

    flat = jnp.reshape(x, (total,))

    # Common path: element count divides by 128 (true for typical NCHW
    # activations) -> no pad, no slice.  Ragged path: minimal pad to a lane
    # multiple, slice the tail off afterwards.
    if total % _LANE == 0:
        padded = total
    else:
        padded = pl.cdiv(total, _LANE) * _LANE
        flat = jnp.pad(flat, (0, padded - total))

    lanes = _choose_lanes(padded)
    rows = padded // lanes

    # Block rows: ~_TARGET_BLOCK_BYTES per buffer, rounded to the dtype's
    # native sublane multiple; fall back to the full row extent (always legal)
    # when the array is small.
    br = _TARGET_BLOCK_BYTES // (lanes * itemsize)
    br = max(sub, (br // sub) * sub)
    block_rows = rows if br >= rows else br
    grid = pl.cdiv(rows, block_rows)

    flat2d = jnp.reshape(flat, (rows, lanes))

    out2d = pl.pallas_call(
        _copy_kernel,
        out_shape=jax.ShapeDtypeStruct((rows, lanes), flat2d.dtype),
        grid_spec=pltpu.PrefetchScalarGridSpec(
            num_scalar_prefetch=0,
            grid=(grid,),
            in_specs=[pl.BlockSpec((block_rows, lanes), lambda i: (i, 0))],
            out_specs=pl.BlockSpec((block_rows, lanes), lambda i: (i, 0)),
        ),
        compiler_params=pltpu.CompilerParams(
            dimension_semantics=("parallel",),
        ),
        # Identity copy: let XLA reuse the input buffer for the output.
        input_output_aliases={0: 0},
        cost_estimate=pl.CostEstimate(
            flops=0,
            transcendentals=0,
            bytes_accessed=2 * total * itemsize,
        ),
    )(flat2d)

    out_flat = jnp.reshape(out2d, (padded,))
    if padded != total:
        out_flat = out_flat[:total]
    return jnp.reshape(out_flat, out_shape)


class View:
    """JAX/Pallas counterpart of the PyTorch `View` nn.Module."""

    def __init__(self, *shape):
        self.shape = shape

    def __call__(self, x):
        return view_pallas(x, *self.shape)


if __name__ == "__main__":
    key = jax.random.PRNGKey(0)
    # NCHW input, same convention as the PyTorch module's callers.
    x = jax.random.normal(key, (2, 4, 16, 16), dtype=jnp.float32)

    # View(2, -1): flatten all but the batch dim.
    module = View(2, -1)
    out = jax.block_until_ready(module(x))

    ref = jnp.reshape(x, (2, -1))
    assert out.shape == (2, 4 * 16 * 16), out.shape
    assert out.dtype == x.dtype
    assert bool(jnp.all(out == ref))

    # Secondary check: bf16 input exercises the dtype-dependent sublane path,
    # and a multi-axis target shape.
    xb = x.astype(jnp.bfloat16)
    out_b = jax.block_until_ready(View(-1, 16, 16)(xb))
    assert out_b.shape == (8, 16, 16)
    assert bool(jnp.all(out_b == jnp.reshape(xb, (8, 16, 16))))

    print("KERNEL_OK")
</pallas_src>

<mosaic_0001>
module attributes {stable_mosaic.version = 11 : i64} {
  func.func @_copy_kernel(%arg0: i32, %arg1: memref<1x2048xf32, #tpu.memory_space<vmem>>, %arg2: memref<1x2048xf32, #tpu.memory_space<vmem>>) attributes {dimension_semantics = [#tpu.dimension_semantics<parallel>], iteration_bounds = array<i64: 1>, scalar_prefetch = 0 : i64, scratch_operands = 0 : i64, tpu.core_type = #tpu.core_type<tc>, window_params = [{transform_indices = @transform_0, window_bounds = array<i64: 1, 2048>}, {transform_indices = @transform_1, window_bounds = array<i64: 1, 2048>}]} {
    %c0 = arith.constant 0 : index
    %c0_0 = arith.constant 0 : index
    %0 = vector.load %arg1[%c0, %c0_0] : memref<1x2048xf32, #tpu.memory_space<vmem>>, vector<1x2048xf32>
    %c0_1 = arith.constant 0 : index
    %c0_2 = arith.constant 0 : index
    %1 = vector.load %arg2[%c0_1, %c0_2] : memref<1x2048xf32, #tpu.memory_space<vmem>>, vector<1x2048xf32>
    tpu.vector_store %arg2[%c0_1, %c0_2], %0 {strides = array<i32>} : memref<1x2048xf32, #tpu.memory_space<vmem>>, vector<1x2048xf32>,
    return
  }
  func.func @transform_0(%arg0: i32) -> (i32, i32) {
    %c0_i32 = arith.constant 0 : i32
    %c0_i32_0 = arith.constant 0 : i32
    return %arg0, %c0_i32 : i32, i32
  }
  func.func @transform_1(%arg0: i32) -> (i32, i32) {
    %c0_i32 = arith.constant 0 : i32
    %c0_i32_0 = arith.constant 0 : i32
    return %arg0, %c0_i32 : i32, i32
  }
}

</mosaic_0001>

<bundles_post_ra>
// kernel: tpu_custom_call.1
= control target key start
LH: loop header
LB: loop body
LE: loop exit
PB: predicated region body
PF: predicated region fallthrough
CT: control target
= control target key end

     0   :  { %6 = vsyncpa [#allocation3], 0  ;;  %s126_s0 = inlined_call_operand.hbm [shape: f32[1,2048], index: 0, kind: input, shape index: {}, may-alias: {0,1}]   ;;  %s127_s1 = inlined_call_operand.hbm [shape: f32[1,2048], index: 1, kind: output, shape index: {}, may-alias: {0,1}]  }
   0x1   :  { %7 = vsyncpa [#allocation4], 0  ;;  %s90_s6 = smov [#allocation2]   ;;  %s42_s10 = scalar_lea.hbm %s126_s0, 256 }
   0x2   :  { %s14_s7 = sshll.u32 %s90_s6, 4  ;;  %p43_p0 = scmp.ne.s32.totalorder %s126_s0, %s42_s10  ;;  %s15_s7 = int_to_ptr.vmem [resolvable:$true] %s14_s7 }
   0x3   :  { %p46_p1 = scmp.lt.u32.totalorder %s42_s10, %s126_s0 }
   0x5   :  { %p48_p2 = pnand %p46_p1, %p43_p0 }
   0x7   :  { %51 = shalt.err (!%p48_p2)
}
   0x8   :  { %s52_s15 = scalar_lea.vmem %s15_s7, 256  ;;  %p57_p4 = scmp.lt.s32.totalorder %s15_s7, %s15_s7 }
   0x9   :  { %p53_p3 = scmp.ne.s32.totalorder %s15_s7, %s52_s15  ;;  %p58_p5 = scmp.lt.s32.totalorder %s52_s15, %s52_s15 }
   0xb   :  { %p59_p6 = por %p58_p5, %p57_p4 }
   0xd   :  { %p60_p7 = pnand %p59_p6, %p53_p3 }
   0xf   :  { %63 = shalt.err (!%p60_p7)
}
  0x10   :  { %17 = dma.hbm_to_vmem [thread:$0]  %s126_s0, 256, %s15_s7, [#allocation3]  }
  0x11   :  { %86 = dma.done.wait [#allocation3], 256  }
  0x12   :  { %87 = vsyncadd [#allocation3], 4294967040  ;;  %s91_s18 = smov [#allocation5]   ;;  %v21_v0 = vld [vmem:[#allocation2] sm:$0xff]  ;;  %v22_v1 = vld [vmem:[#allocation2 + $0x8] sm:$0xff] }
  0x13   :  { %s31_s19 = sshll.u32 %s91_s18, 4  ;;  %23 = vst [vmem:[#allocation5] sm:$0xff] %v21_v0  ;;  %24 = vst [vmem:[#allocation5 + $0x8] sm:$0xff] %v22_v1  ;;  %s32_s19 = int_to_ptr.vmem [resolvable:$true] %s31_s19 }
  0x14   :  { %s64_s20 = scalar_lea.vmem %s32_s19, 256  ;;  %p69_p9 = scmp.lt.s32.totalorder %s32_s19, %s32_s19 }
  0x15   :  { %p65_p8 = scmp.ne.s32.totalorder %s32_s19, %s64_s20  ;;  %p70_p10 = scmp.lt.s32.totalorder %s64_s20, %s64_s20 }
  0x17   :  { %p71_p11 = por %p70_p10, %p69_p9 }
  0x19   :  { %p72_p12 = pnand %p71_p11, %p65_p8 }
  0x1b   :  { %75 = shalt.err (!%p72_p12)
}
  0x1c   :  { %s76_s0 = scalar_lea.hbm %s127_s1, 256 }
  0x1d   :  { %p77_p13 = scmp.ne.s32.totalorder %s127_s1, %s76_s0  ;;  %p80_p0 = scmp.lt.u32.totalorder %s76_s0, %s127_s1 }
  0x1f   :  { %p82_p1 = pnand %p80_p0, %p77_p13 }
  0x21   :  { %85 = shalt.err (!%p82_p1)
}
  0x22   :  { %34 = dma.vmem_to_hbm [thread:$0]  %s32_s19, 256, %s127_s1, [#allocation4]  }
  0x23   :  { %88 = dma.done.wait [#allocation4], 256  }
  0x24   :  { %89 = vsyncadd [#allocation4], 4294967040 }
  0x25   :  { %38 = vsyncpa [#allocation3], 1 }
  0x26   :  { %39 = vsyncpa [#allocation4], 1 }

</bundles_post_ra>
